<compile_context>
chip_gen: v7x
topology: tpu7x:2x2x1
jax: 0.10.0
libtpu: 0.0.40
codegen_flags: <defaults>
</compile_context>

<pallas_src>
import functools

import jax
import jax.numpy as jnp
from jax.experimental import pallas as pl
from jax.experimental.pallas import tpu as pltpu

LANE = 128          # batch (lane) tiles must be multiples of this
SUBLANE_F32 = 8     # pad the tiny output-feature axis to one f32 sublane group


def _round_up(n, m):
    return (n + m - 1) // m * m


# -----------------------------------------------------------------------------
# Kernel: feature-major fused MLP.  Shapes inside one grid step:
#   xT  : (state_dim, TB) bf16        w1T: (Hp, state_dim) bf16   b1: (Hp, 1) f32
#   w2T : (Hp, Hp)        bf16        b2 : (Hp, 1) f32
#   w3T : (Ap, Hp)        bf16        b3 : (Ap, 1) f32
#   outT: (Ap, TB)        f32   (batch on the lane axis -> dense unmasked stores)
# -----------------------------------------------------------------------------
def qnetwork_kernel(xT_ref, w1T_ref, b1_ref, w2T_ref, b2_ref, w3T_ref, b3_ref,
                    outT_ref):
    # fc1 + ReLU (bf16 operands -> f32 accumulation on the MXU)
    h1 = jnp.dot(w1T_ref[...], xT_ref[...], preferred_element_type=jnp.float32)
    h1 = jnp.maximum(h1 + b1_ref[...], 0.0)
    # fc2 + ReLU
    h2 = jnp.dot(w2T_ref[...], h1.astype(w2T_ref.dtype),
                 preferred_element_type=jnp.float32)
    h2 = jnp.maximum(h2 + b2_ref[...], 0.0)
    # fc3 (no activation); lane-dense f32 store
    q = jnp.dot(w3T_ref[...], h2.astype(w3T_ref.dtype),
                preferred_element_type=jnp.float32)
    outT_ref[...] = (q + b3_ref[...]).astype(outT_ref.dtype)


def prepare_params(params):
    """One-time weight prep (hoisted out of the per-step forward path):
    transpose to feature-major, zero-pad hidden->128 / action->8, cast to bf16.
    Zero padding keeps the math exactly equivalent (padded rows stay 0)."""
    state_dim, hidden_dim = params["w1"].shape
    action_dim = params["w3"].shape[1]
    Hp = _round_up(hidden_dim, LANE)
    Ap = _round_up(action_dim, SUBLANE_F32)

    def padT(w, rows, cols):                 # (in, out) -> zero-padded (out, in)
        wT = w.T
        return jnp.pad(wT, ((0, rows - wT.shape[0]), (0, cols - wT.shape[1])))

    def pad_col(b, rows):                    # (1, out) -> zero-padded (out, 1)
        bT = b.reshape(-1, 1)
        return jnp.pad(bT, ((0, rows - bT.shape[0]), (0, 0)))

    bf16 = jnp.bfloat16
    return {
        "w1T": padT(params["w1"], Hp, state_dim).astype(bf16),
        "b1": pad_col(params["b1"], Hp).astype(jnp.float32),
        "w2T": padT(params["w2"], Hp, Hp).astype(bf16),
        "b2": pad_col(params["b2"], Hp).astype(jnp.float32),
        "w3T": padT(params["w3"], Ap, Hp).astype(bf16),
        "b3": pad_col(params["b3"], Ap).astype(jnp.float32),
        "dims": (state_dim, hidden_dim, action_dim, Hp, Ap),
    }


def qnetwork_forward(x, prep, *, batch_tile=1024):
    """x: (B, state_dim) f32.  prep: output of prepare_params().
    Returns (B, action_dim) f32 (same semantics as the PyTorch QNetwork;
    bf16 MXU operands, f32 accumulation)."""
    B, state_dim = x.shape
    sd, hidden_dim, action_dim, Hp, Ap = prep["dims"]
    assert sd == state_dim, "x feature dim does not match prepared params"

    # Batch tile: lane-dense (multiple of 128), big enough to amortize the
    # ~0.35us per-grid-step overhead; force >=2 grid steps so the "parallel"
    # axis actually splits across v7x's two TensorCores.
    TB = min(batch_tile, _round_up(B, LANE))
    TB = _round_up(TB, LANE)
    Bp = _round_up(B, TB)
    if Bp // TB < 2:
        if TB > LANE:
            TB = _round_up(TB // 2, LANE)
            Bp = _round_up(B, TB)
        if Bp // TB < 2:
            Bp = 2 * TB

    # Feature-major input: (state_dim, Bp) bf16, batch on the lane axis.
    xT = jnp.pad(x.T, ((0, 0), (0, Bp - B))).astype(jnp.bfloat16)

    grid = (Bp // TB,)
    const = lambda i: (0, 0)   # weights / biases: VMEM-resident, DMA'd once

    flops = 2 * B * (state_dim * hidden_dim + hidden_dim * hidden_dim
                     + hidden_dim * action_dim)
    bytes_accessed = (
        Bp * state_dim * 2 + Bp * Ap * 4                      # x in, q out
        + (Hp * state_dim + Hp * Hp + Ap * Hp) * 2            # bf16 weights
        + (2 * Hp + Ap) * 4                                    # f32 biases
    )

    outT = pl.pallas_call(
        qnetwork_kernel,
        out_shape=jax.ShapeDtypeStruct((Ap, Bp), jnp.float32),
        grid=grid,
        in_specs=[
            pl.BlockSpec((state_dim, TB), lambda i: (0, i)),   # streamed x tiles
            pl.BlockSpec((Hp, state_dim), const),
            pl.BlockSpec((Hp, 1), const),
            pl.BlockSpec((Hp, Hp), const),
            pl.BlockSpec((Hp, 1), const),
            pl.BlockSpec((Ap, Hp), const),
            pl.BlockSpec((Ap, 1), const),
        ],
        out_specs=pl.BlockSpec((Ap, TB), lambda i: (0, i)),    # lane-dense store
        compiler_params=pltpu.CompilerParams(
            dimension_semantics=("parallel",),                 # megacore on v7x
        ),
        cost_estimate=pl.CostEstimate(flops=flops, transcendentals=0,
                                      bytes_accessed=bytes_accessed),
    )(xT, prep["w1T"], prep["b1"], prep["w2T"], prep["b2"],
      prep["w3T"], prep["b3"])

    # Tiny (Ap x B) slice + transpose back to the caller's (B, action_dim).
    return outT[:action_dim, :B].T


def init_params(key, state_dim, action_dim, hidden_dim=64):
    """Deterministic init mimicking PyTorch Linear default (uniform +/- 1/sqrt(fan_in))."""
    ks = jax.random.split(key, 6)

    def lin(kw, kb, fan_in, fan_out):
        bound = 1.0 / jnp.sqrt(fan_in)
        w = jax.random.uniform(kw, (fan_in, fan_out), jnp.float32, -bound, bound)
        b = jax.random.uniform(kb, (1, fan_out), jnp.float32, -bound, bound)
        return w, b

    w1, b1 = lin(ks[0], ks[1], state_dim, hidden_dim)
    w2, b2 = lin(ks[2], ks[3], hidden_dim, hidden_dim)
    w3, b3 = lin(ks[4], ks[5], hidden_dim, action_dim)
    return {"w1": w1, "b1": b1, "w2": w2, "b2": b2, "w3": w3, "b3": b3}


def qnetwork_ref_f32(x, p):
    h1 = jnp.maximum(x @ p["w1"] + p["b1"], 0.0)
    h2 = jnp.maximum(h1 @ p["w2"] + p["b2"], 0.0)
    return h2 @ p["w3"] + p["b3"]


def qnetwork_ref_bf16(x, p):
    """Pure-JAX reference mirroring the kernel's bf16-operand / f32-accumulate math."""
    bf16 = jnp.bfloat16
    dot = functools.partial(jnp.dot, preferred_element_type=jnp.float32)
    h1 = jnp.maximum(dot(x.astype(bf16), p["w1"].astype(bf16)) + p["b1"], 0.0)
    h2 = jnp.maximum(dot(h1.astype(bf16), p["w2"].astype(bf16)) + p["b2"], 0.0)
    return dot(h2.astype(bf16), p["w3"].astype(bf16)) + p["b3"]


if __name__ == "__main__":
    state_dim, action_dim, hidden_dim = 8, 4, 64
    batch = 2

    key = jax.random.PRNGKey(0)
    k_params, k_x = jax.random.split(key)
    params = init_params(k_params, state_dim, action_dim, hidden_dim)
    x = jax.random.normal(k_x, (batch, state_dim), jnp.float32)

    # Weight prep is done once (hoisted out of the per-call path, as in an RL loop).
    prep = prepare_params(params)
    fwd = jax.jit(lambda xx: qnetwork_forward(xx, prep))

    out = jax.block_until_ready(fwd(x))
    assert out.shape == (batch, action_dim)

    # Loose check vs full-f32 math (bf16 operands cost ~1e-2 relative).
    ref32 = qnetwork_ref_f32(x, params)
    assert jnp.allclose(out, ref32, atol=5e-2, rtol=5e-2), "mismatch vs f32 reference"

    # Tight check vs a reference using the same bf16-operand / f32-accumulate path.
    refbf = qnetwork_ref_bf16(x, params)
    assert jnp.allclose(out, refbf, atol=2e-3, rtol=2e-3), "mismatch vs bf16-path reference"

    print("KERNEL_OK")
</pallas_src>

<mosaic_0001>
module attributes {stable_mosaic.version = 11 : i64} {
  func.func @qnetwork_kernel(%arg0: i32, %arg1: memref<8x128xbf16, #tpu.memory_space<vmem>>, %arg2: memref<128x8xbf16, #tpu.memory_space<vmem>>, %arg3: memref<128x1xf32, #tpu.memory_space<vmem>>, %arg4: memref<128x128xbf16, #tpu.memory_space<vmem>>, %arg5: memref<128x1xf32, #tpu.memory_space<vmem>>, %arg6: memref<8x128xbf16, #tpu.memory_space<vmem>>, %arg7: memref<8x1xf32, #tpu.memory_space<vmem>>, %arg8: memref<8x128xf32, #tpu.memory_space<vmem>>) attributes {dimension_semantics = [#tpu.dimension_semantics<parallel>], iteration_bounds = array<i64: 2>, scalar_prefetch = 0 : i64, scratch_operands = 0 : i64, tpu.core_type = #tpu.core_type<tc>, window_params = [{transform_indices = @transform_0, window_bounds = array<i64: 8, 128>}, {pipeline_mode = #tpu.pipeline_mode<synchronous>, transform_indices = @transform_1, window_bounds = array<i64: 128, 8>}, {pipeline_mode = #tpu.pipeline_mode<synchronous>, transform_indices = @transform_2, window_bounds = array<i64: 128, 1>}, {pipeline_mode = #tpu.pipeline_mode<synchronous>, transform_indices = @transform_3, window_bounds = array<i64: 128, 128>}, {pipeline_mode = #tpu.pipeline_mode<synchronous>, transform_indices = @transform_4, window_bounds = array<i64: 128, 1>}, {pipeline_mode = #tpu.pipeline_mode<synchronous>, transform_indices = @transform_5, window_bounds = array<i64: 8, 128>}, {pipeline_mode = #tpu.pipeline_mode<synchronous>, transform_indices = @transform_6, window_bounds = array<i64: 8, 1>}, {transform_indices = @transform_7, window_bounds = array<i64: 8, 128>}]} {
    %c0 = arith.constant 0 : index
    %c0_0 = arith.constant 0 : index
    %0 = vector.load %arg2[%c0, %c0_0] : memref<128x8xbf16, #tpu.memory_space<vmem>>, vector<128x8xbf16>
    %c0_1 = arith.constant 0 : index
    %c0_2 = arith.constant 0 : index
    %1 = vector.load %arg1[%c0_1, %c0_2] : memref<8x128xbf16, #tpu.memory_space<vmem>>, vector<8x128xbf16>
    %cst = arith.constant dense<0.000000e+00> : vector<128x128xf32>
    %2 = tpu.matmul %0, %1, %cst {dimension_numbers = #tpu.dot_dimension_numbers<[1], [0], [0], [1], [0, 0, 1, 1], [], []>} : vector<128x8xbf16>, vector<8x128xbf16>, vector<128x128xf32> -> vector<128x128xf32>
    %c0_3 = arith.constant 0 : index
    %c0_4 = arith.constant 0 : index
    %3 = vector.load %arg3[%c0_3, %c0_4] : memref<128x1xf32, #tpu.memory_space<vmem>>, vector<128x1xf32>
    %4 = vector.broadcast %3 : vector<128x1xf32> to vector<128x128xf32>
    %5 = arith.addf %2, %4 : vector<128x128xf32>
    %cst_5 = arith.constant 0.000000e+00 : f32
    %6 = vector.broadcast %cst_5 : f32 to vector<128x128xf32>
    %7 = arith.maximumf %5, %6 : vector<128x128xf32>
    %c0_6 = arith.constant 0 : index
    %c0_7 = arith.constant 0 : index
    %8 = vector.load %arg4[%c0_6, %c0_7] : memref<128x128xbf16, #tpu.memory_space<vmem>>, vector<128x128xbf16>
    %9 = arith.truncf %7 : vector<128x128xf32> to vector<128x128xbf16>
    %cst_8 = arith.constant dense<0.000000e+00> : vector<128x128xf32>
    %10 = tpu.matmul %8, %9, %cst_8 {dimension_numbers = #tpu.dot_dimension_numbers<[1], [0], [0], [1], [0, 0, 1, 1], [], []>} : vector<128x128xbf16>, vector<128x128xbf16>, vector<128x128xf32> -> vector<128x128xf32>
    %c0_9 = arith.constant 0 : index
    %c0_10 = arith.constant 0 : index
    %11 = vector.load %arg5[%c0_9, %c0_10] : memref<128x1xf32, #tpu.memory_space<vmem>>, vector<128x1xf32>
    %12 = vector.broadcast %11 : vector<128x1xf32> to vector<128x128xf32>
    %13 = arith.addf %10, %12 : vector<128x128xf32>
    %cst_11 = arith.constant 0.000000e+00 : f32
    %14 = vector.broadcast %cst_11 : f32 to vector<128x128xf32>
    %15 = arith.maximumf %13, %14 : vector<128x128xf32>
    %c0_12 = arith.constant 0 : index
    %c0_13 = arith.constant 0 : index
    %16 = vector.load %arg6[%c0_12, %c0_13] : memref<8x128xbf16, #tpu.memory_space<vmem>>, vector<8x128xbf16>
    %17 = arith.truncf %15 : vector<128x128xf32> to vector<128x128xbf16>
    %cst_14 = arith.constant dense<0.000000e+00> : vector<8x128xf32>
    %18 = tpu.matmul %16, %17, %cst_14 {dimension_numbers = #tpu.dot_dimension_numbers<[1], [0], [0], [1], [0, 0, 1, 1], [], []>} : vector<8x128xbf16>, vector<128x128xbf16>, vector<8x128xf32> -> vector<8x128xf32>
    %c0_15 = arith.constant 0 : index
    %c0_16 = arith.constant 0 : index
    %19 = vector.load %arg7[%c0_15, %c0_16] : memref<8x1xf32, #tpu.memory_space<vmem>>, vector<8x1xf32>
    %20 = vector.broadcast %19 : vector<8x1xf32> to vector<8x128xf32>
    %21 = arith.addf %18, %20 : vector<8x128xf32>
    %c0_17 = arith.constant 0 : index
    %c0_18 = arith.constant 0 : index
    %22 = vector.load %arg8[%c0_17, %c0_18] : memref<8x128xf32, #tpu.memory_space<vmem>>, vector<8x128xf32>
    tpu.vector_store %arg8[%c0_17, %c0_18], %21 {strides = array<i32>} : memref<8x128xf32, #tpu.memory_space<vmem>>, vector<8x128xf32>,
    return
  }
  func.func @transform_0(%arg0: i32) -> (i32, i32) {
    %c0_i32 = arith.constant 0 : i32
    %c0_i32_0 = arith.constant 0 : i32
    return %c0_i32, %arg0 : i32, i32
  }
  func.func @transform_1(%arg0: i32) -> (i32, i32) {
    %c0_i32 = arith.constant 0 : i32
    %c0_i32_0 = arith.constant 0 : i32
    %c0_i32_1 = arith.constant 0 : i32
    return %c0_i32, %c0_i32_0 : i32, i32
  }
  func.func @transform_2(%arg0: i32) -> (i32, i32) {
    %c0_i32 = arith.constant 0 : i32
    %c0_i32_0 = arith.constant 0 : i32
    %c0_i32_1 = arith.constant 0 : i32
    return %c0_i32, %c0_i32_0 : i32, i32
  }
  func.func @transform_3(%arg0: i32) -> (i32, i32) {
    %c0_i32 = arith.constant 0 : i32
    %c0_i32_0 = arith.constant 0 : i32
    %c0_i32_1 = arith.constant 0 : i32
    return %c0_i32, %c0_i32_0 : i32, i32
  }
  func.func @transform_4(%arg0: i32) -> (i32, i32) {
    %c0_i32 = arith.constant 0 : i32
    %c0_i32_0 = arith.constant 0 : i32
    %c0_i32_1 = arith.constant 0 : i32
    return %c0_i32, %c0_i32_0 : i32, i32
  }
  func.func @transform_5(%arg0: i32) -> (i32, i32) {
    %c0_i32 = arith.constant 0 : i32
    %c0_i32_0 = arith.constant 0 : i32
    %c0_i32_1 = arith.constant 0 : i32
    return %c0_i32, %c0_i32_0 : i32, i32
  }
  func.func @transform_6(%arg0: i32) -> (i32, i32) {
    %c0_i32 = arith.constant 0 : i32
    %c0_i32_0 = arith.constant 0 : i32
    %c0_i32_1 = arith.constant 0 : i32
    return %c0_i32, %c0_i32_0 : i32, i32
  }
  func.func @transform_7(%arg0: i32) -> (i32, i32) {
    %c0_i32 = arith.constant 0 : i32
    %c0_i32_0 = arith.constant 0 : i32
    return %c0_i32, %arg0 : i32, i32
  }
}

</mosaic_0001>

<bundles_post_ra>
// kernel: _lambda_.1
= control target key start
LH: loop header
LB: loop body
LE: loop exit
PB: predicated region body
PF: predicated region fallthrough
CT: control target
= control target key end

     0   :  { %12 = vsyncpa [#allocation3], 0  ;;  %s1639_s0 = inlined_call_operand.vmem [shape: bf16[8,256], index: 0, kind: input, shape index: {}]   ;;  %s1640_s1 = inlined_call_operand.hbm [shape: bf16[128,8], index: 1, kind: input, shape index: {}]   ;;  %s1641_s2 = inlined_call_operand.hbm [shape: f32[128,1], index: 2, kind: input, shape index: {}]   ;;  %s1642_s3 = inlined_call_operand.hbm [shape: bf16[128,128], index: 3, kind: input, shape index: {}]   ;;  %s1643_s4 = inlined_call_operand.hbm [shape: f32[128,1], index: 4, kind: input, shape index: {}]   ;;  %s1644_s5 = inlined_call_operand.vmem [shape: bf16[8,128], index: 5, kind: input, shape index: {}]   ;;  %s1645_s6 = inlined_call_operand.vmem [shape: f32[8,1], index: 6, kind: input, shape index: {}]   ;;  %s1646_s7 = inlined_call_operand.vmem [shape: f32[8,256], index: 7, kind: output, shape index: {}]  }
   0x1   :  { %13 = vsyncpa [#allocation5], 0 }
   0x2   :  { %14 = vsyncpa [#allocation8], 0  ;;  %s1463_s24 = smov 0  }
   0x3 LB: > { %s1412_s25 = smov [#allocation4]   ;;  %s1469_s27 = sadd.s32 4294967295, %s1410_s24   ;;  %s1410_s24 = sphi %s1463_s24, %s20_s24  }
   0x4   : > { %s228_s26 = sshll.u32 %s1412_s25, 4  ;;  %p1062_p0 = scmp.ge.s32.totalorder %s1410_s24, 1  ;;  %s1474_s26 = int_to_ptr.vmem [resolvable:$true] %s228_s26 }
   0x5   : > { %p203_p1 = scmp.lt.s32.totalorder %s1410_s24, 3  ;;  %p1647_p2 = scmp.eq.s32.totalorder %s1469_s27, 0 }
   0x6   : > { %s1413_s29 = smov [#allocation2]   ;;  %s1414_s9 = smov [#allocation6]  }
   0x7   : > { %p1476_p3 = pnand %p1062_p0, %p203_p1  ;;  %s215_s30 = sshll.u32 %s1413_s29, 4  ;;  %s1482_s30 = int_to_ptr.vmem [resolvable:$true] %s215_s30 }
   0x8   : > { %s1490_s10 = sshll.u32 %s1414_s9, 4  ;;  %s1280_s13 = scalar_lea.hbm %s1641_s2, 2048  ;;  %s242_s10 = int_to_ptr.vmem [resolvable:$true] %s1490_s10 }
   0x9   : > { %s1649_s28 = scalar_select %p1476_p3, 1, 0 }
   0xa   : > { %p1222_p4 = pneg %p1476_p3  ;;  %p1281_p6 = scmp.ne.s32.totalorder %s1641_s2, %s1280_s13 }
   0xb   : > { %p1287_p10 = scmp.lt.u32.totalorder %s1280_s13, %s1641_s2 }
   0xc   : > { %p1486_p5 = pnand %p1647_p2, %p1222_p4 }
   0xe   : > { %p1500_p7 = pneg %p1486_p5 }
  0x10   : > { %p1283_p8 = pnand %p1500_p7, %p1281_p6 }
  0x12   : > { %p1284_p9 = pneg %p1283_p8 }
  0x14   : > { %p1289_p11 = pnand %p1287_p10, %p1284_p9 }
  0x16   : > { %1292 = shalt.err (!%p1289_p11)
}
  0x17   : > { %s1293_s19 = scalar_lea.vmem %s1474_s26, 2048  ;;  %p1301_p1 = scmp.lt.s32.totalorder %s1474_s26, %s1474_s26 }
  0x18   : > { %p1294_p12 = scmp.ne.s32.totalorder %s1474_s26, %s1293_s19  ;;  %p1302_p4 = scmp.lt.s32.totalorder %s1293_s19, %s1293_s19 }
  0x1a   : > { %p1296_p13 = pnand %p1294_p12, %p1500_p7  ;;  %p1303_p6 = por %p1302_p4, %p1301_p1 }
  0x1c   : > { %p1297_p0 = pneg %p1296_p13 }
  0x1e   : > { %p1304_p8 = pnand %p1303_p6, %p1297_p0 }
  0x20   : > { %1307 = shalt.err (!%p1304_p8)
}
  0x21   : > { %s1415_s20 = smov 128   ;;  %s1416_s21 = smov 8  }
  0x22   : > { %1228 = dma.hbm_to_vmem [thread:$0]  (!%p1486_p5), %s1641_s2, 2048, %s1474_s26, [#allocation5], %s1415_s20, %s1415_s20, %s1416_s21  }
  0x23   : > { %s1308_s9 = scalar_lea.hbm %s1640_s1, 1024 }
  0x24   : > { %p1309_p9 = scmp.ne.s32.totalorder %s1640_s1, %s1308_s9  ;;  %p1315_p12 = scmp.lt.u32.totalorder %s1308_s9, %s1640_s1 }
  0x26   : > { %p1311_p10 = pnand %p1309_p9, %p1500_p7 }
  0x28   : > { %p1312_p11 = pneg %p1311_p10 }
  0x2a   : > { %p1317_p13 = pnand %p1315_p12, %p1312_p11 }
  0x2c   : > { %1320 = shalt.err (!%p1317_p13)
}
  0x2d   : > { %s1321_s26 = scalar_lea.vmem %s1482_s30, 1024  ;;  %p1329_p6 = scmp.lt.s32.totalorder %s1482_s30, %s1482_s30 }
  0x2e   : > { %p1322_p0 = scmp.ne.s32.totalorder %s1482_s30, %s1321_s26  ;;  %p1330_p8 = scmp.lt.s32.totalorder %s1321_s26, %s1321_s26 }
  0x30   : > { %p1324_p1 = pnand %p1322_p0, %p1500_p7  ;;  %p1331_p9 = por %p1330_p8, %p1329_p6 }
  0x32   : > { %p1325_p4 = pneg %p1324_p1 }
  0x34   : > { %p1332_p10 = pnand %p1331_p9, %p1325_p4 }
  0x36   : > { %1335 = shalt.err (!%p1332_p10)
}
  0x37   : > { %s1417_s15 = smov 64   ;;  %s1418_s17 = smov 4  }
  0x38   : > { %1225 = dma.hbm_to_vmem [thread:$0]  (!%p1486_p5), %s1640_s1, 1024, %s1482_s30, [#allocation3], %s1417_s15, %s1417_s15, %s1418_s17  }
  0x39   : > { %s1419_s22 = smov [#allocation7]   ;;  %s1336_s9 = scalar_lea.hbm %s1642_s3, 1024 }
  0x3a   : > { %s254_s23 = sshll.u32 %s1419_s22, 4  ;;  %p1337_p11 = scmp.ne.s32.totalorder %s1642_s3, %s1336_s9  ;;  %s255_s23 = int_to_ptr.vmem [resolvable:$true] %s254_s23 }
  0x3b   : > { %p1343_p0 = scmp.lt.u32.totalorder %s1336_s9, %s1642_s3 }
  0x3c   : > { %p1339_p12 = pnand %p1337_p11, %p1500_p7 }
  0x3e   : > { %p1340_p13 = pneg %p1339_p12 }
  0x40   : > { %p1345_p1 = pnand %p1343_p0, %p1340_p13 }
  0x42   : > { %1348 = shalt.err (!%p1345_p1)
}
  0x43   : > { %s1349_s30 = scalar_lea.vmem %s242_s10, 1024  ;;  %p1357_p9 = scmp.lt.s32.totalorder %s242_s10, %s242_s10 }
  0x44   : > { %p1350_p4 = scmp.ne.s32.totalorder %s242_s10, %s1349_s30  ;;  %p1358_p10 = scmp.lt.s32.totalorder %s1349_s30, %s1349_s30 }
  0x46   : > { %p1352_p6 = pnand %p1350_p4, %p1500_p7  ;;  %p1359_p2 = por %p1358_p10, %p1357_p9 }
  0x48   : > { %p1353_p8 = pneg %p1352_p6 }
  0x4a   : > { %p1360_p3 = pnand %p1359_p2, %p1353_p8 }
  0x4c   : > { %1363 = shalt.err (!%p1360_p3)
}
  0x4d   : > { %1231 = dma.hbm_to_vmem [thread:$0]  (!%p1486_p5), %s1642_s3, 1024, %s242_s10, [#allocation5], %s1417_s15, %s1417_s15, %s1418_s17  }
  0x4e   : > { %s1364_s25 = scalar_lea.hbm %s1643_s4, 2048 }
  0x4f   : > { %p1365_p11 = scmp.ne.s32.totalorder %s1643_s4, %s1364_s25  ;;  %p1371_p3 = scmp.lt.u32.totalorder %s1364_s25, %s1643_s4 }
  0x51   : > { %p1367_p12 = pnand %p1365_p11, %p1500_p7 }
  0x53   : > { %p1368_p2 = pneg %p1367_p12 }
  0x55   : > { %p1373_p13 = pnand %p1371_p3, %p1368_p2 }
  0x57   : > { %1376 = shalt.err (!%p1373_p13)
}
  0x58   : > { %s1377_s13 = scalar_lea.vmem %s255_s23, 2048  ;;  %p1385_p6 = scmp.lt.s32.totalorder %s255_s23, %s255_s23 }
  0x59   : > { %p1378_p0 = scmp.ne.s32.totalorder %s255_s23, %s1377_s13  ;;  %p1386_p8 = scmp.lt.s32.totalorder %s1377_s13, %s1377_s13 }
  0x5b   : > { %p1380_p1 = pnand %p1378_p0, %p1500_p7  ;;  %p1387_p9 = por %p1386_p8, %p1385_p6 }
  0x5d   : > { %p1381_p4 = pneg %p1380_p1 }
  0x5f   : > { %p1388_p10 = pnand %p1387_p9, %p1381_p4 }
  0x61   : > { %1391 = shalt.err (!%p1388_p10)
}
  0x62   : > { %1234 = dma.hbm_to_vmem [thread:$0]  (!%p1486_p5), %s1643_s4, 2048, %s255_s23, [#allocation8], %s1415_s20, %s1415_s20, %s1416_s21  }
  0x63   : > { %p1652_p11 = scmp.ne.s32.totalorder %s1649_s28, 0 }
  0x64   : > { %p1653_p7 = scmp.eq.s32.totalorder (!%p1652_p11), %s1469_s27, 0 }
  0x65   : > { %283 = sbr.rel (%p1652_p11) target bundleno = 845 (0x34d), region = 48 }
  0x6c   : > { %1397 = dma.done.wait (%p1653_p7), [#allocation3], 1024   ;;  %p1654_p12 = pmov %p1653_p7 }
  0x6d   : > { %p1655_p2 = pmov %p1653_p7 }
  0x6e   : > { %1399 = vsyncadd (%p1654_p12), [#allocation3], 4294966272 }
  0x6f   : > { %1401 = dma.done.wait (%p1655_p2), [#allocation5], 3072   ;;  %p1656_p3 = pmov %p1655_p2 }
  0x70   : > { %p1657_p13 = pmov %p1655_p2 }
  0x71   : > { %1403 = vsyncadd (%p1656_p3), [#allocation5], 4294964224 }
  0x72   : > { %1405 = dma.done.wait (%p1657_p13), [#allocation8], 2048   ;;  %p1658_p5 = pmov %p1655_p2 }
  0x73   : > { %p325_p0 = scmp.lt.s32.totalorder %s1469_s27, 1  ;;  %v1420_v0 = vmov 0   ;;  %vm512_vm0 = vcmask 1043456   ;;  %vm487_vm1 = vcmask 64512   ;;  %v1264_v3 = vld [vmem:[#allocation2] sm:$0xff]   ;;  %v1265_v4 = vld [vmem:[#allocation2 + $0x8] sm:$0xff]  }
  0x74   : > { %1407 = vsyncadd (%p1658_p5), [#allocation8], 4294965248  ;;  %1262 = vset.pattern.permute.xlu0 %v1420_v0  ;;  %1263 = vset.pattern.permute.xlu1 %v1420_v0  ;;  %v1266_v5 = vld [vmem:[#allocation2 + $0x10] sm:$0xff]   ;;  %v351_v6 = vld [vmem:[#allocation4] sm:$0xff]  ;;  %vm1422_vm2 = vmmov 0  }
  0x75   : > { %s1660_s27 = smov (!%p325_p0, %s1469_s27), 1  ;;  %1137 = vmatprep.mubr.msk.bf16.mxu0 %vm487_vm1, %v1264_v3  ;;  %369 = vperm.xlu0 %1262, %v351_v6   ;;  %v352_v7 = vld [vmem:[#allocation4 + $0x8] sm:$0xff]  ;;  %v1267_v8 = vld [vmem:[#allocation2 + $0x18] sm:$0xff]   ;;  %v353_v9 = vld [vmem:[#allocation4 + $0x10] sm:$0xff] }
  0x76   : > { %s1073_s28 = sshll.u32 %s1660_s27, 2  ;;  %v1268_v10 = vld [vmem:[#allocation2 + $0x20] sm:$0xff]   ;;  %379 = vperm.xlu1 %1263, %v353_v9   ;;  %v354_v11 = vld [vmem:[#allocation4 + $0x18] sm:$0xff]  ;;  %v356_v13 = vld [vmem:[#allocation4 + $0x28] sm:$0xff]  ;;  %s1074_s30 = sshll.u32 %s1660_s27, 3 }
  0x77   : > { %s328_s20 = scalar_lea.vmem %s1639_s0, %s1073_s28  ;;  %v355_v12 = vld [vmem:[#allocation4 + $0x20] sm:$0xff]  ;;  %v357_v14 = vld [vmem:[#allocation4 + $0x30] sm:$0xff]  ;;  %v1269_v15 = vld [vmem:[#allocation2 + $0x28] sm:$0xff]   ;;  %s332_s19 = scalar_lea.vmem %s1646_s7, %s1074_s30 }
  0x78   : > { %v350_v1 = vld [vmem:[%s328_s20] sm:$0xf]  ;;  %v1270_v16 = vld [vmem:[#allocation2 + $0x30] sm:$0xff]   ;;  %v358_v18 = vld [vmem:[#allocation4 + $0x38] sm:$0xff] }
  0x79   : > { %1205 = vmatprep.subr.msk.bf16.mxu0 %vm512_vm0, %v350_v1  ;;  %v514_v2 = vsel %vm512_vm0, %v350_v1, 0  ;;  %374 = vperm.xlu0 %1262, %v352_v7   ;;  %v359_v17 = vld [vmem:[#allocation4 + $0x40] sm:$0xff]  ;;  %v360_v19 = vld [vmem:[#allocation4 + $0x48] sm:$0xff]  ;;  %v361_v20 = vld [vmem:[#allocation4 + $0x50] sm:$0xff] }
  0x7a   : > { %1136 = vmatpush3.bf16.msra.mxu0 %v514_v2  ;;  %384 = vperm.xlu1 %1263, %v354_v11   ;;  %v1271_v21 = vld [vmem:[#allocation2 + $0x38] sm:$0xff]   ;;  %v363_v23 = vld [vmem:[#allocation4 + $0x60] sm:$0xff]  ;;  %v364_v24 = vld [vmem:[#allocation4 + $0x68] sm:$0xff] }
  0x7b   : > { %v362_v22 = vld [vmem:[#allocation4 + $0x58] sm:$0xff]  ;;  %v365_v25 = vld [vmem:[#allocation4 + $0x70] sm:$0xff]  ;;  %v653_v27 = vld [vmem:[#allocation7] sm:$0xff] }
  0x7c   : > { %v366_v26 = vld [vmem:[#allocation4 + $0x78] sm:$0xff]  ;;  %v654_v28 = vld [vmem:[#allocation7 + $0x8] sm:$0xff]  ;;  %v655_v29 = vld [vmem:[#allocation7 + $0x10] sm:$0xff] }
  0x7d   : > { %1138 = vmatmul.mubr.msk.bf16.vlgmr.msra.gmra.mrb[0].mxu0 %vm487_vm1, %v1265_v4  ;;  %389 = vperm.xlu0 %1262, %v355_v12   ;;  %v656_v30 = vld [vmem:[#allocation7 + $0x18] sm:$0xff]  ;;  %v657_v31 = vld [vmem:[#allocation7 + $0x20] sm:$0xff]  ;;  %v658_v32 = vld [vmem:[#allocation7 + $0x28] sm:$0xff] }
  0x7e   : > { %1141 = vmatprep.mubr.msk.bf16.mxu0 %vm487_vm1, %v1266_v5  ;;  %394 = vperm.xlu1 %1263, %v356_v13   ;;  %v659_v33 = vld [vmem:[#allocation7 + $0x30] sm:$0xff]  ;;  %v660_v34 = vld [vmem:[#allocation7 + $0x38] sm:$0xff]  ;;  %v661_v35 = vld [vmem:[#allocation7 + $0x40] sm:$0xff] }
  0x7f   : > { %v662_v36 = vld [vmem:[#allocation7 + $0x48] sm:$0xff]  ;;  %v663_v37 = vld [vmem:[#allocation7 + $0x50] sm:$0xff]  ;;  %v664_v38 = vld [vmem:[#allocation7 + $0x58] sm:$0xff] }
  0x80   : > { %v665_v39 = vld [vmem:[#allocation7 + $0x60] sm:$0xff]  ;;  %v666_v40 = vld [vmem:[#allocation7 + $0x68] sm:$0xff]  ;;  %v667_v41 = vld [vmem:[#allocation7 + $0x70] sm:$0xff] }
  0x81   : > { %399 = vperm.xlu0 %1262, %v357_v14   ;;  %v668_v42 = vld [vmem:[#allocation7 + $0x78] sm:$0xff]  ;;  %v919_v43 = vld [vmem:[%s1645_s6] sm:$0xff] }
  0x82   : > { %404 = vperm.xlu1 %1263, %v358_v18   ;;  %v1272_v44 = vld [vmem:[#allocation6] sm:$0xff]  }
  0x83   : > { %1169 = vmatprep.mubr.bf16.mxu1 %v1272_v44 }
  0x85   : > { %1142 = vmatmul.mubr.msk.bf16.gmra.mrb[4].mxu0 %vm487_vm1, %v1267_v8  ;;  %409 = vperm.xlu0 %1262, %v359_v17  }
  0x86   : > { %1145 = vmatprep.mubr.msk.bf16.mxu0 %vm487_vm1, %v1268_v10  ;;  %414 = vperm.xlu1 %1263, %v360_v19  }
  0x89   : > { %419 = vperm.xlu0 %1262, %v361_v20  }
  0x8a   : > { %424 = vperm.xlu1 %1263, %v362_v22  }
  0x8d   : > { %1146 = vmatmul.mubr.msk.bf16.gmra.mrb[8].mxu0 %vm487_vm1, %v1269_v15  ;;  %429 = vperm.xlu0 %1262, %v363_v23  }
  0x8e   : > { %1149 = vmatprep.mubr.msk.bf16.mxu0 %vm487_vm1, %v1270_v16  ;;  %434 = vperm.xlu1 %1263, %v364_v24  }
  0x91   : > { %439 = vperm.xlu0 %1262, %v365_v25  }
  0x92   : > { %444 = vperm.xlu1 %1263, %v366_v26  }
  0x95   : > { %1150 = vmatmul.mubr.msk.bf16.gmra.mrb[12].mxu0 %vm487_vm1, %v1271_v21  ;;  %671 = vperm.xlu0 %1262, %v653_v27  }
  0x96   : > { %676 = vperm.xlu1 %1263, %v654_v28  }
  0x99   : > { %681 = vperm.xlu0 %1262, %v655_v29  }
  0x9a   : > { %686 = vperm.xlu1 %1263, %v656_v30  }
  0x9d   : > { %691 = vperm.xlu0 %1262, %v657_v31  }
  0x9e   : > { %696 = vperm.xlu1 %1263, %v658_v32  }
  0xa1   : > { %701 = vperm.xlu0 %1262, %v659_v33  }
  0xa2   : > { %706 = vperm.xlu1 %1263, %v660_v34  }
  0xa5   : > { %711 = vperm.xlu0 %1262, %v661_v35  }
  0xa6   : > { %716 = vperm.xlu1 %1263, %v662_v36  }
  0xa9   : > { %721 = vperm.xlu0 %1262, %v663_v37  }
  0xaa   : > { %726 = vperm.xlu1 %1263, %v664_v38  }
  0xad   : > { %731 = vperm.xlu0 %1262, %v665_v39  }
  0xae   : > { %736 = vperm.xlu1 %1263, %v666_v40  }
  0xb1   : > { %741 = vperm.xlu0 %1262, %v667_v41  }
  0xb2   : > { %746 = vperm.xlu1 %1263, %v668_v42  }
  0xb5   : > { %922 = vperm.xlu0 %1262, %v919_v43  }
  0xf4   : > { %v370_v45 = vpop.permute.xlu0 %369 }
  0xf5   : > { %v380_v46 = vpop.permute.xlu1 %379 }
  0xf8   : > { %v375_v47 = vpop.permute.xlu0 %374 }
  0xf9   : > { %v385_v48 = vpop.permute.xlu1 %384 }
  0xfc   : > { %v390_v49 = vpop.permute.xlu0 %389 }
  0xfd   : > { %v395_v50 = vpop.permute.xlu1 %394 }
 0x100   : > { %v400_v51 = vpop.permute.xlu0 %399 }
 0x101   : > { %v405_v55 = vpop.permute.xlu1 %404 }
 0x104   : > { %v410_v63 = vpop.permute.xlu0 %409 }
 0x105   : > { %v415_v3 = vpop.permute.xlu1 %414 }
 0x108   : > { %v420_v12 = vpop.permute.xlu0 %419 }
 0x109   : > { %v425_v16 = vpop.permute.xlu1 %424 }
 0x10c   : > { %v430_v24 = vpop.permute.xlu0 %429 }
 0x10d   : > { %v435_v29 = vpop.permute.xlu1 %434 }
 0x110   : > { %v440_v36 = vpop.permute.xlu0 %439 }
 0x111   : > { %v445_v41 = vpop.permute.xlu1 %444 }
 0x150   : > { %v1139_v52 = vpop.f32.mrb[0].mxu0 }
 0x151   : > { %v559_v53 = vadd.f32 %v1139_v52, %v380_v46  ;;  %v550_v54 = vpop.f32.mrb[1].mxu0 }
 0x152   : > { %v551_v56 = vadd.f32 %v550_v54, %v370_v45  ;;  %v1140_v57 = vpop.f32.mrb[2].mxu0  ;;  %v1274_v54 = vld [vmem:[#allocation6 + $0x10] sm:$0xff]  }
 0x153   : > { %v562_v58 = vadd.f32 %v1140_v57, %v385_v48  ;;  %v553_v59 = vpop.f32.mrb[3].mxu0  ;;  %v615_v61 = vmax.f32 %v559_v53, 0.0  ;;  %v1273_v53 = vld [vmem:[#allocation6 + $0x8] sm:$0xff]  }
 0x154   : > { %v554_v60 = vadd.f32 %v553_v59, %v375_v47  ;;  %v613_v0 = vmax.f32 %v551_v56, 0.0  ;;  %v1276_v56 = vld [vmem:[#allocation6 + $0x20] sm:$0xff]   ;;  %v1277_v57 = vld [vmem:[#allocation6 + $0x28] sm:$0xff]   ;;  %v1279_v59 = vld [vmem:[#allocation6 + $0x38] sm:$0xff]  }
 0x155   : > { %v616_v62 = vmax.f32 %v562_v58, 0.0  ;;  %v1278_v58 = vld [vmem:[#allocation6 + $0x30] sm:$0xff]  }
 0x156   : > { %v614_v1 = vmax.f32 %v554_v60, 0.0  ;;  %v1421_v60 = vmov 0.0  }
 0x157   : > { %v646_v2 = vpack.c.bf16 %v616_v62, %v615_v61  ;;  %1185 = vmatprep.subr.bf16.mxu0 %v1421_v60  ;;  %1201 = vmatprep.mubr.msk.bf16.mxu0 %vm1422_vm2, %v1421_v60  ;;  %v672_v61 = vpop.permute.xlu0 %671  ;;  %v677_v62 = vpop.permute.xlu1 %676 }
 0x158   : > { %v1143_v4 = vpop.f32.mrb[4].mxu0  ;;  %v645_v5 = vpack.c.bf16 %v614_v1, %v613_v0 }
 0x159   : > { %v575_v6 = vadd.f32 %v1143_v4, %v400_v51  ;;  %v566_v7 = vpop.f32.mrb[5].mxu0 }
 0x15a   : > { %v567_v8 = vadd.f32 %v566_v7, %v390_v49  ;;  %v1144_v9 = vpop.f32.mrb[6].mxu0  ;;  %1153 = vmatprep.subr.bf16.mxu1 %v645_v5 }
 0x15b   : > { %v578_v10 = vadd.f32 %v1144_v9, %v405_v55  ;;  %v569_v11 = vpop.f32.mrb[7].mxu0  ;;  %1154 = vmatpush3.bf16.msra.mxu1 %v645_v5  ;;  %v619_v14 = vmax.f32 %v575_v6, 0.0  ;;  %v1275_v55 = vld [vmem:[#allocation6 + $0x18] sm:$0xff]   ;;  %v687_v0 = vpop.permute.xlu1 %686 }
 0x15c   : > { %v570_v13 = vadd.f32 %v569_v11, %v395_v50  ;;  %1155 = vmatprep.subr.bf16.mxu1 %v646_v2  ;;  %v617_v17 = vmax.f32 %v567_v8, 0.0 }
 0x15d   : > { %v620_v15 = vmax.f32 %v578_v10, 0.0 }
 0x15e   : > { %v618_v18 = vmax.f32 %v570_v13, 0.0 }
 0x15f   : > { %v648_v19 = vpack.c.bf16 %v620_v15, %v619_v14  ;;  %1156 = vmatpush3.bf16.msra.mxu1 %v646_v2  ;;  %v697_v2 = vpop.permute.xlu1 %696 }
 0x160   : > { %v647_v20 = vpack.c.bf16 %v618_v18, %v617_v17  ;;  %v1147_v21 = vpop.f32.mrb[8].mxu0 }
 0x161   : > { %v591_v22 = vadd.f32 %v1147_v21, %v420_v12  ;;  %v582_v23 = vpop.f32.mrb[9].mxu0 }
 0x162   : > { %v583_v25 = vadd.f32 %v582_v23, %v410_v63  ;;  %v1148_v26 = vpop.f32.mrb[10].mxu0  ;;  %1157 = vmatprep.subr.bf16.mxu1 %v647_v20  ;;  %v682_v63 = vpop.permute.xlu0 %681 }
 0x163   : > { %v594_v27 = vadd.f32 %v1148_v26, %v425_v16  ;;  %v585_v28 = vpop.f32.mrb[11].mxu0  ;;  %1158 = vmatpush3.bf16.msra.mxu1 %v647_v20  ;;  %v623_v31 = vmax.f32 %v591_v22, 0.0  ;;  %v707_v7 = vpop.permute.xlu1 %706 }
 0x164   : > { %v586_v30 = vadd.f32 %v585_v28, %v415_v3  ;;  %1159 = vmatprep.subr.bf16.mxu1 %v648_v19  ;;  %v621_v33 = vmax.f32 %v583_v25, 0.0 }
 0x165   : > { %v624_v32 = vmax.f32 %v594_v27, 0.0 }
 0x166   : > { %v622_v34 = vmax.f32 %v586_v30, 0.0  ;;  %v692_v1 = vpop.permute.xlu0 %691 }
 0x167   : > { %v650_v35 = vpack.c.bf16 %v624_v32, %v623_v31  ;;  %1160 = vmatpush3.bf16.msra.mxu1 %v648_v19  ;;  %v717_v19 = vpop.permute.xlu1 %716 }
 0x168   : > { %v649_v37 = vpack.c.bf16 %v622_v34, %v621_v33  ;;  %v1151_v38 = vpop.f32.mrb[12].mxu0 }
 0x169   : > { %v607_v39 = vadd.f32 %v1151_v38, %v440_v36  ;;  %v598_v40 = vpop.f32.mrb[13].mxu0 }
 0x16a   : > { %v599_v42 = vadd.f32 %v598_v40, %v430_v24  ;;  %v1152_v43 = vpop.f32.mrb[14].mxu0  ;;  %1161 = vmatprep.subr.bf16.mxu1 %v649_v37  ;;  %v702_v3 = vpop.permute.xlu0 %701 }
 0x16b   : > { %v610_v44 = vadd.f32 %v1152_v43, %v445_v41  ;;  %v601_v45 = vpop.f32.mrb[15].mxu0  ;;  %1162 = vmatpush3.bf16.msra.mxu1 %v649_v37  ;;  %v627_v47 = vmax.f32 %v607_v39, 0.0  ;;  %v727_v32 = vpop.permute.xlu1 %726 }
 0x16c   : > { %v602_v46 = vadd.f32 %v601_v45, %v435_v29  ;;  %1163 = vmatprep.subr.bf16.mxu1 %v650_v35  ;;  %v625_v49 = vmax.f32 %v599_v42, 0.0 }
 0x16d   : > { %v628_v48 = vmax.f32 %v610_v44, 0.0 }
 0x16e   : > { %v626_v50 = vmax.f32 %v602_v46, 0.0  ;;  %v712_v15 = vpop.permute.xlu0 %711 }
 0x16f   : > { %v652_v51 = vpack.c.bf16 %v628_v48, %v627_v47  ;;  %1164 = vmatpush3.bf16.msra.mxu1 %v650_v35  ;;  %v737_v45 = vpop.permute.xlu1 %736 }
 0x170   : > { %v651_v52 = vpack.c.bf16 %v626_v50, %v625_v49 }
 0x172   : > { %1165 = vmatprep.subr.bf16.mxu1 %v651_v52  ;;  %v722_v28 = vpop.permute.xlu0 %721 }
 0x173   : > { %1166 = vmatpush3.bf16.msra.mxu1 %v651_v52 }
 0x174   : > { %1167 = vmatprep.subr.bf16.mxu1 %v652_v51 }
 0x176   : > { %v732_v40 = vpop.permute.xlu0 %731 }
 0x177   : > { %1168 = vmatpush3.bf16.msra.mxu1 %v652_v51 }
 0x17a   : > { %1170 = vmatmul.mubr.bf16.vlgmr.msra.gmra.mrb[0].mxu1 %v1273_v53  ;;  %v742_v52 = vpop.permute.xlu0 %741 }
 0x17b   : > { %1173 = vmatprep.mubr.bf16.mxu1 %v1274_v54 }
 0x182   : > { %1174 = vmatmul.mubr.bf16.gmra.mrb[4].mxu1 %v1275_v55 }
 0x183   : > { %1177 = vmatprep.mubr.bf16.mxu1 %v1276_v56 }
 0x18a   : > { %1178 = vmatmul.mubr.bf16.gmra.mrb[8].mxu1 %v1277_v57  ;;  %v747_v57 = vpop.permute.xlu1 %746 }
 0x18b   : > { %1181 = vmatprep.mubr.bf16.mxu1 %v1278_v58 }
 0x192   : > { %1182 = vmatmul.mubr.bf16.gmra.mrb[12].mxu1 %v1279_v59 }
 0x24d   : > { %v1171_v4 = vpop.f32.mrb[0].mxu1 }
 0x24e   : > { %v840_v5 = vadd.f32 %v1171_v4, %v682_v63  ;;  %v831_v6 = vpop.f32.mrb[1].mxu1 }
 0x24f   : > { %v832_v8 = vadd.f32 %v831_v6, %v672_v61  ;;  %v1172_v9 = vpop.f32.mrb[2].mxu1  ;;  %v910_v6 = vld [vmem:[%s1644_s5] sm:$0xf] }
 0x250   : > { %v843_v10 = vadd.f32 %v1172_v9, %v687_v0  ;;  %v834_v11 = vpop.f32.mrb[3].mxu1  ;;  %v896_v13 = vmax.f32 %v840_v5, 0.0 }
 0x251   : > { %v835_v12 = vadd.f32 %v834_v11, %v677_v62  ;;  %v894_v16 = vmax.f32 %v832_v8, 0.0 }
 0x252   : > { %v897_v14 = vmax.f32 %v843_v10, 0.0 }
 0x253   : > { %v895_v17 = vmax.f32 %v835_v12, 0.0 }
 0x254   : > { %v912_v18 = vpack.c.bf16 %v897_v14, %v896_v13 }
 0x255   : > { %v911_v20 = vpack.c.bf16 %v895_v17, %v894_v16  ;;  %v1175_v21 = vpop.f32.mrb[4].mxu1 }
 0x256   : > { %v856_v22 = vadd.f32 %v1175_v21, %v702_v3  ;;  %v847_v23 = vpop.f32.mrb[5].mxu1 }
 0x257   : > { %v848_v24 = vadd.f32 %v847_v23, %v692_v1  ;;  %v1176_v25 = vpop.f32.mrb[6].mxu1  ;;  %1186 = vmatpush3.bf16.msra.mxu0 %v911_v20 }
 0x258   : > { %v859_v26 = vadd.f32 %v1176_v25, %v707_v7  ;;  %v850_v27 = vpop.f32.mrb[7].mxu1  ;;  %1187 = vmatprep.subr.bf16.mxu0 %v1421_v60  ;;  %v900_v30 = vmax.f32 %v856_v22, 0.0  ;;  %v923_v7 = vpop.permute.xlu0 %922 }
 0x259   : > { %v851_v29 = vadd.f32 %v850_v27, %v697_v2  ;;  %v898_v33 = vmax.f32 %v848_v24, 0.0 }
 0x25a   : > { %v901_v31 = vmax.f32 %v859_v26, 0.0 }
 0x25b   : > { %v899_v34 = vmax.f32 %v851_v29, 0.0  ;;  %1188 = vmatpush3.bf16.msra.mxu0 %v912_v18 }
 0x25c   : > { %v914_v35 = vpack.c.bf16 %v901_v31, %v900_v30  ;;  %1189 = vmatprep.subr.bf16.mxu0 %v1421_v60 }
 0x25d   : > { %v913_v36 = vpack.c.bf16 %v899_v34, %v898_v33  ;;  %v1179_v37 = vpop.f32.mrb[8].mxu1 }
 0x25e   : > { %v872_v38 = vadd.f32 %v1179_v37, %v722_v28  ;;  %v863_v39 = vpop.f32.mrb[9].mxu1 }
 0x25f   : > { %v864_v41 = vadd.f32 %v863_v39, %v712_v15  ;;  %v1180_v42 = vpop.f32.mrb[10].mxu1  ;;  %1190 = vmatpush3.bf16.msra.mxu0 %v913_v36 }
 0x260   : > { %v875_v43 = vadd.f32 %v1180_v42, %v727_v32  ;;  %v866_v44 = vpop.f32.mrb[11].mxu1  ;;  %1191 = vmatprep.subr.bf16.mxu0 %v1421_v60  ;;  %v904_v47 = vmax.f32 %v872_v38, 0.0 }
 0x261   : > { %v867_v46 = vadd.f32 %v866_v44, %v717_v19  ;;  %v902_v49 = vmax.f32 %v864_v41, 0.0 }
 0x262   : > { %v905_v48 = vmax.f32 %v875_v43, 0.0 }
 0x263   : > { %v903_v50 = vmax.f32 %v867_v46, 0.0  ;;  %1192 = vmatpush3.bf16.msra.mxu0 %v914_v35 }
 0x264   : > { %v916_v51 = vpack.c.bf16 %v905_v48, %v904_v47  ;;  %1193 = vmatprep.subr.bf16.mxu0 %v1421_v60 }
 0x265   : > { %v915_v53 = vpack.c.bf16 %v903_v50, %v902_v49  ;;  %v1183_v54 = vpop.f32.mrb[12].mxu1 }
 0x266   : > { %v888_v55 = vadd.f32 %v1183_v54, %v742_v52  ;;  %v879_v56 = vpop.f32.mrb[13].mxu1 }
 0x267   : > { %v880_v58 = vadd.f32 %v879_v56, %v732_v40  ;;  %v1184_v59 = vpop.f32.mrb[14].mxu1  ;;  %1194 = vmatpush3.bf16.msra.mxu0 %v915_v53 }
 0x268   : > { %v891_v61 = vadd.f32 %v1184_v59, %v747_v57  ;;  %v882_v62 = vpop.f32.mrb[15].mxu1  ;;  %1195 = vmatprep.subr.bf16.mxu0 %v1421_v60  ;;  %v908_v0 = vmax.f32 %v888_v55, 0.0 }
 0x269   : > { %v883_v63 = vadd.f32 %v882_v62, %v737_v45  ;;  %v906_v2 = vmax.f32 %v880_v58, 0.0 }
 0x26a   : > { %v909_v1 = vmax.f32 %v891_v61, 0.0 }
 0x26b   : > { %v907_v3 = vmax.f32 %v883_v63, 0.0  ;;  %1196 = vmatpush3.bf16.msra.mxu0 %v916_v51 }
 0x26c   : > { %v918_v4 = vpack.c.bf16 %v909_v1, %v908_v0  ;;  %1197 = vmatprep.subr.bf16.mxu0 %v1421_v60 }
 0x26d   : > { %v917_v5 = vpack.c.bf16 %v907_v3, %v906_v2 }
 0x26f   : > { %1198 = vmatpush3.bf16.msra.mxu0 %v917_v5 }
 0x270   : > { %1199 = vmatprep.subr.bf16.mxu0 %v1421_v60 }
 0x273   : > { %1200 = vmatpush3.bf16.msra.mxu0 %v918_v4 }
 0x276   : > { %1202 = vmatmul.mubr.bf16.vlgmr.msra.gmra.mrb[16].mxu0 %v910_v6 }
 0x349   : > { %v959_v8 = vpop.f32.mrb[16].mxu0 }
 0x34a   : > { %v960_v9 = vadd.f32 %v959_v8, %v923_v7  ;;  %v1203_v10 = vpop.f32.mrb[17].mxu0 }
 0x34b   : > { %v962_v11 = vpop.f32.mrb[18].mxu0 }
 0x34c   : > { %965 = vst [vmem:[%s332_s19] sm:$0xff] %v960_v9  ;;  %v1204_v12 = vpop.f32.mrb[19].mxu0 }
 0x34d PF: > { %s20_s24 = sadd.s32 1, %s1410_s24  }
 0x34e   : > { %p17_p1 = scmp.ge.s32.totalorder %s20_s24, 4  }
 0x350   :  { %19 = sbr.rel (!%p17_p1) target bundleno = 3 (0x3), region = 95 }
 0x357   :  { %985 = vsyncpa [#allocation3], 1 }
 0x358   :  { %987 = vsyncpa [#allocation3 + $0x1], 1 }
 0x359   :  { %988 = vsyncpa [#allocation5], 1 }
 0x35a   :  { %989 = vsyncpa [#allocation8], 1 }

</bundles_post_ra>
